<compile_context>
chip_gen: v7x
topology: tpu7x:2x2x1
jax: 0.10.0
libtpu: 0.0.40
codegen_flags: <defaults>
</compile_context>

<pallas_src>
import jax
import jax.numpy as jnp
from jax.experimental import pallas as pl
from jax.experimental.pallas import tpu as pltpu


def _round_up(x: int, m: int) -> int:
    return (x + m - 1) // m * m


def _self_attention_kernel(x_ref, w_qkv_ref, mask_ref, out_ref, qkv_ref, wsum_ref):
    """One grid step = (instance n, query-tile i).

    x_ref    : (B*T, D)     this instance's input, flattened in the wrapper
    w_qkv_ref: (D, 3*Dp)    [Wq*scale | Wk | Wv], each padded to a 128-lane boundary
    mask_ref : (B, tq)      query-row length mask for this q-tile
    out_ref  : (B, Dp)      lane-dense output slab (first D columns hold the result)
    qkv_ref  : (B*T, 3*Dp)  fused QKV scratch, persistent across q-tiles
    wsum_ref : (B, T)       running mask-weighted sum of softmax rows over queries
    """
    i = pl.program_id(1)            # query-tile index (reduction axis)
    nq = pl.num_programs(1)

    B, Dp = out_ref.shape
    T = x_ref.shape[0] // B
    tq = mask_ref.shape[1]

    @pl.when(i == 0)
    def _init():
        # One fused QKV projection on the MXU: (B*T, D) @ (D, 3*Dp).
        # Scale is pre-folded into Wq; no in-kernel reshapes or per-projection
        # sub-lane-width stores.
        qkv_ref[...] = jnp.dot(x_ref[...], w_qkv_ref[...],
                               preferred_element_type=jnp.float32)
        wsum_ref[...] = jnp.zeros_like(wsum_ref)

    q0 = pl.multiple_of(i * tq, tq)

    # Per-batch scores for this q-tile: s_b = Q_b[tile] @ K_b^T -> (tq, T).
    # Zero-padded columns [D:Dp] contribute nothing to the contraction.
    # TODO(synk): at realistic T, cast these matmul operands to bf16 (keep f32
    # accumulation) and keep a K^T scratch to avoid any per-tile transpose.
    s_list = []
    for b in range(B):
        qb = qkv_ref[pl.ds(b * T + q0, tq), 0:Dp]          # (tq, Dp), scale folded in
        kb = qkv_ref[pl.ds(b * T, T), Dp:2 * Dp]           # (T, Dp)
        s_list.append(jax.lax.dot_general(
            qb, kb, (((1,), (1,)), ((), ())),
            preferred_element_type=jnp.float32))

    # Legacy F.softmax default on a 3-D tensor: softmax over dim=0 (batch),
    # independently for every (q, k) element.
    if B == 2:
        # Exact 2-way softmax == sigmoid of the score difference.
        w0 = pl.reciprocal(1.0 + jnp.exp(s_list[1] - s_list[0]), approx=True)
        w_list = [w0, 1.0 - w0]
    else:
        m = s_list[0]
        for s_b in s_list[1:]:
            m = jnp.maximum(m, s_b)
        e_list = [jnp.exp(s_b - m) for s_b in s_list]
        denom = e_list[0]
        for e_b in e_list[1:]:
            denom = denom + e_b
        inv = pl.reciprocal(denom, approx=True)            # EUP vrcp
        w_list = [e_b * inv for e_b in e_list]

    # Post-softmax query-row mask folded straight into the sum over queries:
    #   wsum_b += mask_b[tile] (1, tq) @ w_b (tq, T)   (one small MXU matvec)
    for b in range(B):
        mb = mask_ref[pl.ds(b, 1), :]                      # (1, tq)
        wsum_ref[pl.ds(b, 1), :] += jnp.dot(
            mb, w_list[b], preferred_element_type=jnp.float32)

    @pl.when(i == nq - 1)
    def _finalize():
        rows = []
        for b in range(B):
            vb = qkv_ref[pl.ds(b * T, T), 2 * Dp:3 * Dp]   # (T, Dp)
            rows.append(jnp.dot(wsum_ref[pl.ds(b, 1), :], vb,
                                preferred_element_type=jnp.float32))
        # Single (B, Dp) store with Dp a multiple of 128 -> unmasked, lane-dense.
        out_ref[...] = jnp.concatenate(rows, axis=0).astype(out_ref.dtype)


def _vmem_budget_bytes(B, T, D, Dp, tq):
    """Explicit VMEM budget: (8,128)-padded blocks x buffer counts + scratch."""
    def slab(r, c, bufs=1):
        return bufs * _round_up(r, 8) * _round_up(c, 128) * 4   # f32
    total = (slab(B * T, D, bufs=2)        # x block (double-buffered)
             + slab(D, 3 * Dp, bufs=1)     # fused weight (Buffered(1))
             + slab(B, tq, bufs=2)         # mask block
             + slab(B, Dp, bufs=2)         # output block
             + slab(B * T, 3 * Dp)         # fused QKV scratch
             + slab(B, T))                 # wsum accumulator
    # 2x headroom for Mosaic-internal scratch, clamped to v7x physical VMEM.
    return min(max(2 * total, 32 * 1024 * 1024), 64 * 1024 * 1024)


def self_attention_stacked(x, lens, wq_t, wk_t, wv_t, hidden_dim):
    """N independent Self_Attention forwards behind a single pallas_call.

    x: (N, B, T, D) f32; lens: (N, B) int; w*_t: (D, D) pre-transposed (Q = x @ wq_t).
    Returns (N, B, 1, D).
    """
    N, B, T, D = x.shape
    Dp = _round_up(D, 128)
    scale = 1.0 / float(hidden_dim) ** 0.5

    def pad_lanes(w):  # (D, D) -> (D, Dp); zero columns so splits are lane-aligned
        return w if Dp == D else jnp.pad(w, ((0, 0), (0, Dp - D)))

    # Fused [Wq*scale | Wk | Wv]; the 1/sqrt(hidden_dim) scale is folded into
    # the (tiny, per-call-constant) weight instead of the (B,T,T) scores.
    w_qkv = jnp.concatenate(
        [pad_lanes(wq_t * scale), pad_lanes(wk_t), pad_lanes(wv_t)], axis=1)

    # Query-row length mask (mirrors the module's Python loop over `lens`).
    mask = (jnp.arange(T, dtype=jnp.int32)[None, None, :]
            < lens[:, :, None]).astype(x.dtype)             # (N, B, T)

    # Flatten (B, T) in the wrapper so the kernel never reshapes.
    x2d = x.reshape(N, B * T, D)

    # Query tile: full T for small/odd T, 128-multiple tiles otherwise.
    tq = min(T, 512) if T % 128 == 0 else T
    nq = T // tq

    grid_spec = pltpu.PrefetchScalarGridSpec(
        num_scalar_prefetch=0,
        grid=(N, nq),                                       # instances x q-tiles
        in_specs=[
            pl.BlockSpec((None, B * T, D), lambda n, i: (n, 0, 0)),
            # Weight block index never changes -> single-buffer it.
            pl.BlockSpec((D, 3 * Dp), lambda n, i: (0, 0),
                         pipeline_mode=pl.Buffered(1)),
            pl.BlockSpec((None, B, tq), lambda n, i: (n, 0, i)),
        ],
        out_specs=pl.BlockSpec((None, B, Dp), lambda n, i: (n, 0, 0)),
        scratch_shapes=[
            pltpu.VMEM((B * T, 3 * Dp), jnp.float32),       # fused QKV (per instance)
            pltpu.VMEM((B, T), jnp.float32),                # mask-weighted row sums
        ],
    )

    out = pl.pallas_call(
        _self_attention_kernel,
        out_shape=jax.ShapeDtypeStruct((N, B, Dp), x.dtype),
        grid_spec=grid_spec,
        compiler_params=pltpu.CompilerParams(
            # Instances are independent -> "parallel" (both TCs on v7x);
            # the q axis feeds shared accumulators (reduction) -> "arbitrary".
            dimension_semantics=("parallel", "arbitrary"),
            vmem_limit_bytes=_vmem_budget_bytes(B, T, D, Dp, tq),
        ),
    )(x2d, w_qkv, mask)

    # Drop the lane padding and restore the module's (B, 1, D) output shape.
    return out[:, :, :D].reshape(N, B, 1, D)


def self_attention(x, lens, wq_t, wk_t, wv_t, hidden_dim):
    """Single-module forward: x (B, T, D) -> (B, 1, D)."""
    return self_attention_stacked(x[None], lens[None], wq_t, wk_t, wv_t,
                                  hidden_dim)[0]


def _reference(x, lens, wq_t, wk_t, wv_t, hidden_dim):
    """Pure-JAX mirror of the PyTorch module (single instance)."""
    q = x @ wq_t
    k = x @ wk_t
    v = x @ wv_t
    s = jnp.einsum("bqd,bkd->bqk", q, k) / (hidden_dim ** 0.5)
    w = jax.nn.softmax(s, axis=0)                           # legacy dim=0 softmax
    T = x.shape[1]
    mask = (jnp.arange(T)[None, :] < lens[:, None]).astype(x.dtype)
    w = w * mask[:, :, None]
    z = jnp.einsum("bqk,bkd->bqd", w, v)
    return jnp.sum(z, axis=1, keepdims=True)


if __name__ == "__main__":
    hidden_dim = 32
    is_bi_rnn = False
    D = hidden_dim * 2 if is_bi_rnn else hidden_dim
    B, T = 2, 8                      # max(lens) must equal T (as in the module)

    key = jax.random.PRNGKey(0)
    kx, kq, kk, kv, kxs = jax.random.split(key, 5)

    # Deterministic nn.Linear-style init: U(-1/sqrt(fan_in), 1/sqrt(fan_in)).
    bound = 1.0 / (D ** 0.5)
    wq = jax.random.uniform(kq, (D, D), jnp.float32, -bound, bound)  # (out, in)
    wk = jax.random.uniform(kk, (D, D), jnp.float32, -bound, bound)
    wv = jax.random.uniform(kv, (D, D), jnp.float32, -bound, bound)

    # --- single module forward (matches the PyTorch spec shapes) ---
    x = jax.random.normal(kx, (B, T, D), jnp.float32)
    lens = jnp.array([8, 5], dtype=jnp.int32)

    out = jax.block_until_ready(self_attention(x, lens, wq.T, wk.T, wv.T, hidden_dim))
    assert out.shape == (B, 1, D)
    ref = _reference(x, lens, wq.T, wk.T, wv.T, hidden_dim)
    assert jnp.allclose(out, ref, rtol=5e-2, atol=5e-2), "single-instance mismatch"

    # --- many independent forwards batched behind ONE pallas_call ---
    N = 4
    xs = jax.random.normal(kxs, (N, B, T, D), jnp.float32)
    lens_s = jnp.array([[8, 5], [8, 8], [8, 3], [8, 1]], dtype=jnp.int32)

    outs = jax.block_until_ready(
        self_attention_stacked(xs, lens_s, wq.T, wk.T, wv.T, hidden_dim))
    assert outs.shape == (N, B, 1, D)
    refs = jnp.stack([_reference(xs[n], lens_s[n], wq.T, wk.T, wv.T, hidden_dim)
                      for n in range(N)])
    assert jnp.allclose(outs, refs, rtol=5e-2, atol=5e-2), "stacked mismatch"

    print("KERNEL_OK")
</pallas_src>

<mosaic_0001>
module attributes {stable_mosaic.version = 11 : i64} {
  func.func @_self_attention_kernel(%arg0: i32, %arg1: i32, %arg2: memref<1x16x32xf32, #tpu.memory_space<vmem>>, %arg3: memref<32x384xf32, #tpu.memory_space<vmem>>, %arg4: memref<1x2x8xf32, #tpu.memory_space<vmem>>, %arg5: memref<1x2x128xf32, #tpu.memory_space<vmem>>, %arg6: memref<16x384xf32, #tpu.memory_space<vmem>>, %arg7: memref<2x8xf32, #tpu.memory_space<vmem>>) attributes {dimension_semantics = [#tpu.dimension_semantics<parallel>, #tpu.dimension_semantics<arbitrary>], iteration_bounds = array<i64: 1, 1>, scalar_prefetch = 0 : i64, scratch_operands = 2 : i64, tpu.core_type = #tpu.core_type<tc>, window_params = [{transform_indices = @transform_0, window_bounds = array<i64: 1, 16, 32>}, {pipeline_mode = #tpu.pipeline_mode<synchronous>, transform_indices = @transform_1, window_bounds = array<i64: 32, 384>}, {transform_indices = @transform_2, window_bounds = array<i64: 1, 2, 8>}, {transform_indices = @transform_3, window_bounds = array<i64: 1, 2, 128>}]} {
    %c0_i32 = arith.constant 0 : i32
    %0 = arith.cmpi eq, %arg1, %c0_i32 : i32
    %1 = arith.extui %0 : i1 to i32
    %c0_i32_0 = arith.constant 0 : i32
    %2 = arith.cmpi ne, %1, %c0_i32_0 : i32
    scf.if %2 {
      %c0_26 = arith.constant 0 : index
      %c0_27 = arith.constant 0 : index
      %c0_28 = arith.constant 0 : index
      %37 = vector.load %arg2[%c0_26, %c0_27, %c0_28] : memref<1x16x32xf32, #tpu.memory_space<vmem>>, vector<1x16x32xf32>
      %38 = vector.shape_cast %37 : vector<1x16x32xf32> to vector<16x32xf32>
      %c0_29 = arith.constant 0 : index
      %c0_30 = arith.constant 0 : index
      %39 = vector.load %arg3[%c0_29, %c0_30] : memref<32x384xf32, #tpu.memory_space<vmem>>, vector<32x384xf32>
      %cst_31 = arith.constant dense<0.000000e+00> : vector<16x384xf32>
      %40 = tpu.matmul %38, %39, %cst_31 {dimension_numbers = #tpu.dot_dimension_numbers<[1], [0], [0], [1], [0, 0, 1, 1], [], []>} : vector<16x32xf32>, vector<32x384xf32>, vector<16x384xf32> -> vector<16x384xf32>
      %c0_32 = arith.constant 0 : index
      %c0_33 = arith.constant 0 : index
      %41 = vector.load %arg6[%c0_32, %c0_33] : memref<16x384xf32, #tpu.memory_space<vmem>>, vector<16x384xf32>
      tpu.vector_store %arg6[%c0_32, %c0_33], %40 {strides = array<i32>} : memref<16x384xf32, #tpu.memory_space<vmem>>, vector<16x384xf32>,
      %cst_34 = arith.constant 0.000000e+00 : f32
      %42 = vector.broadcast %cst_34 : f32 to vector<2x8xf32>
      %c0_35 = arith.constant 0 : index
      %c0_36 = arith.constant 0 : index
      %43 = vector.load %arg7[%c0_35, %c0_36] : memref<2x8xf32, #tpu.memory_space<vmem>>, vector<2x8xf32>
      tpu.vector_store %arg7[%c0_35, %c0_36], %42 {strides = array<i32>} : memref<2x8xf32, #tpu.memory_space<vmem>>, vector<2x8xf32>,
    } else {
    }
    %c8_i32 = arith.constant 8 : i32
    %3 = arith.muli %arg1, %c8_i32 : i32
    %4 = tpu.assume_multiple %3, 8 : i32
    %c0_i32_1 = arith.constant 0 : i32
    %5 = arith.addi %c0_i32_1, %4 : i32
    %6 = arith.index_cast %5 : i32 to index
    %c0 = arith.constant 0 : index
    %7 = vector.load %arg6[%6, %c0] : memref<16x384xf32, #tpu.memory_space<vmem>>, vector<8x128xf32>
    %c0_2 = arith.constant 0 : index
    %c128 = arith.constant 128 : index
    %8 = vector.load %arg6[%c0_2, %c128] : memref<16x384xf32, #tpu.memory_space<vmem>>, vector<8x128xf32>
    %cst = arith.constant dense<0.000000e+00> : vector<8x8xf32>
    %9 = tpu.matmul %7, %8, %cst {dimension_numbers = #tpu.dot_dimension_numbers<[1], [1], [0], [0], [0, 0, 1, 0], [], []>} : vector<8x128xf32>, vector<8x128xf32>, vector<8x8xf32> -> vector<8x8xf32>
    %c8_i32_3 = arith.constant 8 : i32
    %10 = arith.addi %c8_i32_3, %4 : i32
    %11 = arith.index_cast %10 : i32 to index
    %c0_4 = arith.constant 0 : index
    %12 = vector.load %arg6[%11, %c0_4] : memref<16x384xf32, #tpu.memory_space<vmem>>, vector<8x128xf32>
    %c8 = arith.constant 8 : index
    %c128_5 = arith.constant 128 : index
    %13 = vector.load %arg6[%c8, %c128_5] : memref<16x384xf32, #tpu.memory_space<vmem>>, vector<8x128xf32>
    %cst_6 = arith.constant dense<0.000000e+00> : vector<8x8xf32>
    %14 = tpu.matmul %12, %13, %cst_6 {dimension_numbers = #tpu.dot_dimension_numbers<[1], [1], [0], [0], [0, 0, 1, 0], [], []>} : vector<8x128xf32>, vector<8x128xf32>, vector<8x8xf32> -> vector<8x8xf32>
    %15 = arith.subf %14, %9 : vector<8x8xf32>
    %16 = math.exp %15 : vector<8x8xf32>
    %cst_7 = arith.constant 1.000000e+00 : f32
    %17 = vector.broadcast %cst_7 : f32 to vector<8x8xf32>
    %18 = arith.addf %17, %16 : vector<8x8xf32>
    %19 = tpu.reciprocal %18 {approx = true} : vector<8x8xf32> -> vector<8x8xf32>
    %cst_8 = arith.constant 1.000000e+00 : f32
    %20 = vector.broadcast %cst_8 : f32 to vector<8x8xf32>
    %21 = arith.subf %20, %19 : vector<8x8xf32>
    %c0_9 = arith.constant 0 : index
    %c0_10 = arith.constant 0 : index
    %c0_11 = arith.constant 0 : index
    %22 = vector.load %arg4[%c0_9, %c0_10, %c0_11] : memref<1x2x8xf32, #tpu.memory_space<vmem>>, vector<1x1x8xf32>
    %23 = vector.shape_cast %22 : vector<1x1x8xf32> to vector<1x8xf32>
    %c0_12 = arith.constant 0 : index
    %c0_13 = arith.constant 0 : index
    %24 = vector.load %arg7[%c0_12, %c0_13] : memref<2x8xf32, #tpu.memory_space<vmem>>, vector<1x8xf32>
    %cst_14 = arith.constant dense<0.000000e+00> : vector<1x8xf32>
    %25 = tpu.matmul %23, %19, %cst_14 {dimension_numbers = #tpu.dot_dimension_numbers<[1], [0], [0], [1], [0, 0, 1, 1], [], []>} : vector<1x8xf32>, vector<8x8xf32>, vector<1x8xf32> -> vector<1x8xf32>
    %26 = arith.addf %24, %25 : vector<1x8xf32>
    %c0_15 = arith.constant 0 : index
    %c0_16 = arith.constant 0 : index
    %27 = vector.load %arg7[%c0_15, %c0_16] : memref<2x8xf32, #tpu.memory_space<vmem>>, vector<1x8xf32>
    tpu.vector_store %arg7[%c0_15, %c0_16], %26 {strides = array<i32>} : memref<2x8xf32, #tpu.memory_space<vmem>>, vector<1x8xf32>,
    %c0_17 = arith.constant 0 : index
    %c1 = arith.constant 1 : index
    %c0_18 = arith.constant 0 : index
    %28 = vector.load %arg4[%c0_17, %c1, %c0_18] : memref<1x2x8xf32, #tpu.memory_space<vmem>>, vector<1x1x8xf32>
    %29 = vector.shape_cast %28 : vector<1x1x8xf32> to vector<1x8xf32>
    %c1_19 = arith.constant 1 : index
    %c0_20 = arith.constant 0 : index
    %30 = vector.load %arg7[%c1_19, %c0_20] : memref<2x8xf32, #tpu.memory_space<vmem>>, vector<1x8xf32>
    %cst_21 = arith.constant dense<0.000000e+00> : vector<1x8xf32>
    %31 = tpu.matmul %29, %21, %cst_21 {dimension_numbers = #tpu.dot_dimension_numbers<[1], [0], [0], [1], [0, 0, 1, 1], [], []>} : vector<1x8xf32>, vector<8x8xf32>, vector<1x8xf32> -> vector<1x8xf32>
    %32 = arith.addf %30, %31 : vector<1x8xf32>
    %c1_22 = arith.constant 1 : index
    %c0_23 = arith.constant 0 : index
    %33 = vector.load %arg7[%c1_22, %c0_23] : memref<2x8xf32, #tpu.memory_space<vmem>>, vector<1x8xf32>
    tpu.vector_store %arg7[%c1_22, %c0_23], %32 {strides = array<i32>} : memref<2x8xf32, #tpu.memory_space<vmem>>, vector<1x8xf32>,
    %c0_i32_24 = arith.constant 0 : i32
    %34 = arith.cmpi eq, %arg1, %c0_i32_24 : i32
    %35 = arith.extui %34 : i1 to i32
    %c0_i32_25 = arith.constant 0 : i32
    %36 = arith.cmpi ne, %35, %c0_i32_25 : i32
    scf.if %36 {
      %c0_26 = arith.constant 0 : index
      %c256 = arith.constant 256 : index
      %37 = vector.load %arg6[%c0_26, %c256] : memref<16x384xf32, #tpu.memory_space<vmem>>, vector<8x128xf32>
      %c0_27 = arith.constant 0 : index
      %c0_28 = arith.constant 0 : index
      %38 = vector.load %arg7[%c0_27, %c0_28] : memref<2x8xf32, #tpu.memory_space<vmem>>, vector<1x8xf32>
      %cst_29 = arith.constant dense<0.000000e+00> : vector<1x128xf32>
      %39 = tpu.matmul %38, %37, %cst_29 {dimension_numbers = #tpu.dot_dimension_numbers<[1], [0], [0], [1], [0, 0, 1, 1], [], []>} : vector<1x8xf32>, vector<8x128xf32>, vector<1x128xf32> -> vector<1x128xf32>
      %c8_30 = arith.constant 8 : index
      %c256_31 = arith.constant 256 : index
      %40 = vector.load %arg6[%c8_30, %c256_31] : memref<16x384xf32, #tpu.memory_space<vmem>>, vector<8x128xf32>
      %c1_32 = arith.constant 1 : index
      %c0_33 = arith.constant 0 : index
      %41 = vector.load %arg7[%c1_32, %c0_33] : memref<2x8xf32, #tpu.memory_space<vmem>>, vector<1x8xf32>
      %cst_34 = arith.constant dense<0.000000e+00> : vector<1x128xf32>
      %42 = tpu.matmul %41, %40, %cst_34 {dimension_numbers = #tpu.dot_dimension_numbers<[1], [0], [0], [1], [0, 0, 1, 1], [], []>} : vector<1x8xf32>, vector<8x128xf32>, vector<1x128xf32> -> vector<1x128xf32>
      %43 = tpu.concatenate %39, %42 in 0 : vector<1x128xf32>, vector<1x128xf32> -> vector<2x128xf32>
      %c0_35 = arith.constant 0 : index
      %c0_36 = arith.constant 0 : index
      %c0_37 = arith.constant 0 : index
      %44 = vector.load %arg5[%c0_35, %c0_36, %c0_37] : memref<1x2x128xf32, #tpu.memory_space<vmem>>, vector<1x2x128xf32>
      %45 = vector.shape_cast %44 : vector<1x2x128xf32> to vector<2x128xf32>
      %46 = vector.shape_cast %43 : vector<2x128xf32> to vector<1x2x128xf32>
      tpu.vector_store %arg5[%c0_35, %c0_36, %c0_37], %46 {strides = array<i32>} : memref<1x2x128xf32, #tpu.memory_space<vmem>>, vector<1x2x128xf32>,
    } else {
    }
    return
  }
  func.func @transform_0(%arg0: i32, %arg1: i32) -> (i32, i32, i32) {
    %c0_i32 = arith.constant 0 : i32
    %c0_i32_0 = arith.constant 0 : i32
    %c0_i32_1 = arith.constant 0 : i32
    return %arg0, %c0_i32, %c0_i32_0 : i32, i32, i32
  }
  func.func @transform_1(%arg0: i32, %arg1: i32) -> (i32, i32) {
    %c0_i32 = arith.constant 0 : i32
    %c0_i32_0 = arith.constant 0 : i32
    %c0_i32_1 = arith.constant 0 : i32
    return %c0_i32, %c0_i32_0 : i32, i32
  }
  func.func @transform_2(%arg0: i32, %arg1: i32) -> (i32, i32, i32) {
    %c0_i32 = arith.constant 0 : i32
    %c0_i32_0 = arith.constant 0 : i32
    return %arg0, %c0_i32, %arg1 : i32, i32, i32
  }
  func.func @transform_3(%arg0: i32, %arg1: i32) -> (i32, i32, i32) {
    %c0_i32 = arith.constant 0 : i32
    %c0_i32_0 = arith.constant 0 : i32
    %c0_i32_1 = arith.constant 0 : i32
    return %arg0, %c0_i32, %c0_i32_0 : i32, i32, i32
  }
}

</mosaic_0001>

<bundles_post_ra>
// kernel: tpu_custom_call.1
= control target key start
LH: loop header
LB: loop body
LE: loop exit
PB: predicated region body
PF: predicated region fallthrough
CT: control target
= control target key end

     0   :  { %8 = vsyncpa [#allocation5], 0  ;;  %s993_s0 = inlined_call_operand.hbm [shape: f32[1,16,32], index: 0, kind: input, shape index: {}]   ;;  %s994_s1 = inlined_call_operand.hbm [shape: f32[32,384], index: 1, kind: input, shape index: {}]   ;;  %s995_s2 = inlined_call_operand.vmem [shape: f32[1,2,8], index: 2, kind: input, shape index: {}]   ;;  %s996_s3 = inlined_call_operand.hbm [shape: f32[1,2,128], index: 3, kind: output, shape index: {}]  }
   0x1   :  { %9 = vsyncpa [#allocation8], 0 }
   0x2   :  { %10 = vsyncpa [#allocation6], 0  ;;  %s893_s12 = smov [#allocation4]   ;;  %s821_s16 = scalar_lea.hbm %s993_s0, 256 }
   0x3   :  { %s16_s13 = sshll.u32 %s893_s12, 4  ;;  %p822_p0 = scmp.ne.s32.totalorder %s993_s0, %s821_s16  ;;  %s17_s13 = int_to_ptr.vmem [resolvable:$true] %s16_s13 }
   0x4   :  { %p825_p1 = scmp.lt.u32.totalorder %s821_s16, %s993_s0 }
   0x6   :  { %p827_p2 = pnand %p825_p1, %p822_p0 }
   0x8   :  { %830 = shalt.err (!%p827_p2)
}
   0x9   :  { %s831_s21 = scalar_lea.vmem %s17_s13, 256  ;;  %p836_p4 = scmp.lt.s32.totalorder %s17_s13, %s17_s13 }
   0xa   :  { %p832_p3 = scmp.ne.s32.totalorder %s17_s13, %s831_s21  ;;  %p837_p5 = scmp.lt.s32.totalorder %s831_s21, %s831_s21 }
   0xc   :  { %p838_p6 = por %p837_p5, %p836_p4 }
   0xe   :  { %p839_p7 = pnand %p838_p6, %p832_p3 }
  0x10   :  { %842 = shalt.err (!%p839_p7)
}
  0x11   :  { %s894_s22 = smov 128   ;;  %s895_s23 = smov 8  }
  0x12   :  { %22 = dma.hbm_to_vmem [thread:$0]  %s993_s0, 256, %s17_s13, [#allocation5], %s894_s22, %s894_s22, %s895_s23  }
  0x13   :  { %s896_s26 = smov [#allocation7]   ;;  %s843_s30 = scalar_lea.hbm %s994_s1, 1536 }
  0x14   :  { %s28_s27 = sshll.u32 %s896_s26, 4  ;;  %p844_p8 = scmp.ne.s32.totalorder %s994_s1, %s843_s30  ;;  %s29_s27 = int_to_ptr.vmem [resolvable:$true] %s28_s27 }
  0x15   :  { %p847_p9 = scmp.lt.u32.totalorder %s843_s30, %s994_s1 }
  0x17   :  { %p849_p10 = pnand %p847_p9, %p844_p8 }
  0x19   :  { %852 = shalt.err (!%p849_p10)
}
  0x1a   :  { %s853_s8 = scalar_lea.vmem %s29_s27, 1536  ;;  %p858_p12 = scmp.lt.s32.totalorder %s29_s27, %s29_s27 }
  0x1b   :  { %p854_p11 = scmp.ne.s32.totalorder %s29_s27, %s853_s8  ;;  %p859_p13 = scmp.lt.s32.totalorder %s853_s8, %s853_s8 }
  0x1d   :  { %p860_p0 = por %p859_p13, %p858_p12 }
  0x1f   :  { %p861_p1 = pnand %p860_p0, %p854_p11 }
  0x21   :  { %864 = shalt.err (!%p861_p1)
}
  0x22   :  { %s897_s0 = smov 384   ;;  %s898_s9 = smov 24  }
  0x23   :  { %34 = dma.hbm_to_vmem [thread:$0]  %s994_s1, 1536, %s29_s27, [#allocation8], %s897_s0, %s897_s0, %s898_s9  }
  0x24   :  { %887 = dma.done.wait [#allocation5], 256  }
  0x25   :  { %888 = vsyncadd [#allocation5], 4294967040 }
  0x26   :  { %889 = dma.done.wait [#allocation8], 1536  }
  0x27   :  { %890 = vsyncadd [#allocation8], 4294965760  ;;  %v899_v0 = vmov 0.0   ;;  %v50_v1 = vld [vmem:[#allocation7 + $0x8] sm:$0xff]  ;;  %v53_v2 = vld [vmem:[#allocation7 + $0x20] sm:$0xff]  ;;  %vm61_vm0 = vcmask 261120  }
  0x28   :  { %132 = vmatprep.mubr.f32.mxu0 %v899_v0  ;;  %v49_v3 = vld [vmem:[#allocation7] sm:$0xff]  ;;  %v792_v4 = vpack.c.bf16 %v53_v2, %v50_v1  ;;  %v52_v5 = vld [vmem:[#allocation7 + $0x18] sm:$0xff]  ;;  %v59_v7 = vld [vmem:[#allocation7 + $0x50] sm:$0xff]  ;;  %vm900_vm1 = vmmov 0   ;;  %vm226_vm2 = vcmask 58368   ;;  %vm392_vm3 = vcmask 64512  }
  0x29   :  { %v56_v6 = vld [vmem:[#allocation7 + $0x38] sm:$0xff]  ;;  %v794_v8 = vpack.c.bf16 %v52_v5, %v49_v3  ;;  %v55_v10 = vld [vmem:[#allocation7 + $0x30] sm:$0xff]  ;;  %v58_v11 = vld [vmem:[#allocation7 + $0x48] sm:$0xff]  ;;  %227 = vst.msk [vmem:[#allocation3] sm:$0x3] %vm226_vm2, %v899_v0  ;;  %vm467_vm4 = vcmask 57344  }
  0x2a   :  { %v796_v9 = vpack.c.bf16 %v59_v7, %v56_v6  ;;  %v47_v12 = vld [vmem:[#allocation4] sm:$0xff]  ;;  %793 = vmatprep.subr.bf16.mxu0 %v792_v4  ;;  %v54_v14 = vld [vmem:[#allocation7 + $0x28] sm:$0xff]  ;;  %v798_v15 = vpack.c.bf16 %v58_v11, %v55_v10  ;;  %v57_v17 = vld [vmem:[#allocation7 + $0x40] sm:$0xff]  ;;  %vm702_vm5 = vcmask 1040384  }
  0x2b   :  { %v51_v13 = vld [vmem:[#allocation7 + $0x10] sm:$0xff]  ;;  %759 = vmatprep.mubr.msk.f32.mxu1 %vm61_vm0, %v47_v12  ;;  %795 = vmatpush1.bf16.msra.mxu0 %v794_v8  ;;  %v60_v18 = vld [vmem:[#allocation7 + $0x58] sm:$0xff]  ;;  %v390_v35 = vld [vmem:[%s995_s2] sm:$0x1] }
  0x2c   :  { %v800_v16 = vpack.c.bf16 %v54_v14, %v51_v13  ;;  %797 = vmatprep.subr.bf16.mxu0 %v796_v9  ;;  %v804_v19 = vpack.c.bf16 %v60_v18, %v57_v17  ;;  %v48_v20 = vld [vmem:[#allocation4 + $0x8] sm:$0xff]  ;;  %v469_v38 = vld [vmem:[%s995_s2 + $0x1] sm:$0x1]  ;;  %s901_s2 = smov [#allocation9]  }
  0x2d   :  { %s711_s15 = sshll.u32 %s901_s2, 4  ;;  %s712_s15 = int_to_ptr.vmem [resolvable:$true] %s711_s15 }
  0x2e   :  { %801 = vmatprep.subr.bf16.mxu1 %v800_v16  ;;  %s865_s16 = scalar_lea.vmem %s712_s15, 32  ;;  %p870_p3 = scmp.lt.s32.totalorder %s712_s15, %s712_s15 }
  0x2f   :  { %803 = vmatpush3.bf16.msra.mxu1 %v800_v16  ;;  %799 = vmatpush1.bf16.msra.mxu0 %v798_v15  ;;  %p866_p2 = scmp.ne.s32.totalorder %s712_s15, %s865_s16  ;;  %p871_p4 = scmp.lt.s32.totalorder %s865_s16, %s865_s16 }
  0x30   :  { %805 = vmatprep.subr.bf16.mxu1 %v804_v19  ;;  %767 = vmatprep.subr.mxu0 %v899_v0  ;;  %v391_v39 = vld [vmem:[#allocation3] sm:$0x1]  ;;  %v470_v40 = vld [vmem:[#allocation3 + $0x1] sm:$0x1] }
  0x31   :  { %p872_p5 = por %p871_p4, %p870_p3 }
  0x32   :  { %725 = vmatmul.mubr.msk.f32.vlgmr.msra.gmra.mrb[0].mxu0 %vm61_vm0, %v47_v12 }
  0x33   :  { %807 = vmatpush3.bf16.msra.mxu1 %v804_v19  ;;  %138 = vmatprep.mubr.f32.mxu0 %v899_v0  ;;  %p873_p6 = pnand %p872_p5, %p866_p2 }
  0x34   :  { %762 = vmatprep.subr.mxu1 %v899_v0 }
  0x36   :  { %760 = vmatmul.mubr.msk.f32.vlgmr.msra.gmra.mrb[0].mxu1 %vm61_vm0, %v48_v20  ;;  %726 = vmatmul.mubr.msk.f32.gmra.mrb[2].mxu0 %vm61_vm0, %v48_v20 }
  0x37   :  { %764 = vmatprep.mubr.msk.f32.mxu1 %vm900_vm1, %v899_v0  ;;  %769 = vmatprep.mubr.msk.f32.mxu0 %vm900_vm1, %v899_v0 }
 0x105   :  { %v134_v21 = vpop.f32.mrb[0].mxu0 }
 0x106   :  { %v136_v22 = vpop.f32.mrb[1].mxu0 }
 0x107   :  { %763 = vmatpush3.xpose.msra.mxu1 %v136_v22 }
 0x108   :  { %772 = vmatprep.subr.mxu1 %v899_v0 }
 0x109   :  { %v761_v23 = vpop.f32.mrb[0].mxu1  ;;  %v140_v24 = vpop.f32.mrb[2].mxu0 }
 0x10a   :  { %v211_v25 = vpop.f32.mrb[1].mxu1  ;;  %v142_v26 = vpop.f32.mrb[3].mxu0  ;;  %765 = vmatmul.mubr.f32.vlgmr.msra.gmra.mrb[2].mxu1 %v134_v21 }
 0x10b   :  { %768 = vmatpush3.xpose.msra.mxu0 %v142_v26  ;;  %774 = vmatprep.mubr.msk.f32.mxu1 %vm900_vm1, %v899_v0 }
 0x10c   :  { %777 = vmatprep.subr.mxu0 %v899_v0 }
 0x10e   :  { %770 = vmatmul.mubr.f32.vlgmr.msra.gmra.mrb[4].mxu0 %v140_v24 }
 0x10f   :  { %779 = vmatprep.mubr.msk.f32.mxu0 %vm900_vm1, %v899_v0 }
 0x1dd   :  { %v302_v27 = vpop.f32.mrb[2].mxu1 }
 0x1de   :  { %v766_v28 = vpop.f32.mrb[3].mxu1 }
 0x1e1   :  { %v380_v29 = vpop.f32.mrb[4].mxu0 }
 0x1e2   :  { %v384_v30 = vsub.f32 %v380_v29, %v302_v27  ;;  %v771_v31 = vpop.f32.mrb[5].mxu0 }
 0x1e4   :  { %v385_v32 = vmul.f32 1.442695, %v384_v30 }
 0x1e6   :  { %817 = vpow2.f32 %v385_v32 }
 0x1f0   :  { %v818_v33 = vpop.eup %817 }
 0x1f1   :  { %v387_v34 = vadd.f32 1.0, %v818_v33 }
 0x1f3   :  { %819 = vrcp.f32 %v387_v34 }
 0x1fd   :  { %v820_v36 = vpop.eup %819 }
 0x1fe   :  { %773 = vmatpush3.msra.mxu1 %v820_v36  ;;  %v389_v37 = vsub.f32 1.0, %v820_v36 }
 0x1ff   :  { %782 = vmatprep.subr.mxu1 %v899_v0  ;;  %775 = vmatmul.mubr.msk.f32.vlgmr.msra.gmra.mrb[4].mxu1 %vm392_vm3, %v390_v35 }
 0x200   :  { %778 = vmatpush3.msra.mxu0 %v389_v37  ;;  %783 = vmatpush3.msra.mxu1 %v211_v25 }
 0x201   :  { %787 = vmatprep.subr.mxu0 %v899_v0  ;;  %780 = vmatmul.mubr.msk.f32.vlgmr.msra.gmra.mrb[6].mxu0 %vm392_vm3, %v469_v38 }
 0x202   :  { %788 = vmatpush3.msra.mxu0 %v761_v23  ;;  %789 = vmatprep.mubr.msk.f32.mxu0 %vm900_vm1, %v899_v0 }
 0x203   :  { %784 = vmatprep.mubr.msk.f32.mxu1 %vm900_vm1, %v899_v0 }
 0x2d2   :  { %v462_v41 = vpop.f32.mrb[4].mxu1 }
 0x2d3   :  { %v466_v42 = vadd.f32 %v462_v41, %v391_v39  ;;  %v776_v43 = vpop.f32.mrb[5].mxu1 }
 0x2d4   :  { %v540_v44 = vpop.f32.mrb[6].mxu0 }
 0x2d5   :  { %v544_v45 = vadd.f32 %v540_v44, %v470_v40  ;;  %v781_v46 = vpop.f32.mrb[7].mxu0  ;;  %468 = vst.msk [vmem:[#allocation3] sm:$0x1] %vm467_vm4, %v466_v42 }
 0x2d7   :  { %545 = vst.msk [vmem:[#allocation3 + $0x1] sm:$0x1] %vm467_vm4, %v544_v45 }
 0x2dc   :  { %v550_v47 = vld [vmem:[#allocation3] sm:$0x1] }
 0x2dd   :  { %785 = vmatmul.mubr.msk.f32.vlgmr.msra.gmra.mrb[6].mxu1 %vm392_vm3, %v550_v47 }
 0x2de   :  { %v625_v48 = vld [vmem:[#allocation3 + $0x1] sm:$0x1] }
 0x2df   :  { %790 = vmatmul.mubr.msk.f32.vlgmr.msra.gmra.mrb[8].mxu0 %vm392_vm3, %v625_v48 }
 0x3b0   :  { %v620_v49 = vpop.f32.mrb[6].mxu1 }
 0x3b1   :  { %v786_v50 = vpop.f32.mrb[7].mxu1 }
 0x3b2   :  { %v695_v51 = vpop.f32.mrb[8].mxu0 }
 0x3b3   :  { %v700_v52 = vrot.slane %v695_v51, 7  ;;  %v791_v53 = vpop.f32.mrb[9].mxu0 }
 0x3b5   :  { %v703_v54 = vsel %vm702_vm5, %v620_v49, %v700_v52 }
 0x3b6   :  { %704 = vst [vmem:[#allocation9] sm:$0x3] %v703_v54 }
 0x3b7   :  { %876 = shalt.err (!%p873_p6)
}
 0x3b8   :  { %s877_s19 = scalar_lea.hbm %s996_s3, 32 }
 0x3b9   :  { %p878_p7 = scmp.ne.s32.totalorder %s996_s3, %s877_s19  ;;  %p881_p8 = scmp.lt.u32.totalorder %s877_s19, %s996_s3 }
 0x3bb   :  { %p883_p9 = pnand %p881_p8, %p878_p7 }
 0x3bd   :  { %886 = shalt.err (!%p883_p9)
}
 0x3be   :  { %714 = dma.vmem_to_hbm [thread:$0]  %s712_s15, 32, %s996_s3, [#allocation6]  }
 0x3bf   :  { %891 = dma.done.wait [#allocation6], 32  }
 0x3c0   :  { %892 = vsyncadd [#allocation6], 4294967264 }
 0x3c1   :  { %718 = vsyncpa [#allocation5], 1 }
 0x3c2   :  { %719 = vsyncpa [#allocation8], 1 }
 0x3c3   :  { %720 = vsyncpa [#allocation6], 1 }

</bundles_post_ra>
